<compile_context>
chip_gen: v7x
topology: tpu7x:2x2x1
jax: 0.10.0
libtpu: 0.0.40
codegen_flags: <defaults>
</compile_context>

<pallas_src>
import functools

import jax
import jax.numpy as jnp
from jax.experimental import pallas as pl
from jax.experimental.pallas import tpu as pltpu

_HID1 = 32                 # width of linear_model1 output / embedding dim (fixed by the module)
_PALLAS_MIN_BATCH = 128    # below this, the fused XLA path beats a one-step Pallas grid


def _round_up(n, m):
    return ((n + m - 1) // m) * m


def _con_backbone_kernel(
    act_ref,                       # [k1 + 32, TM]: rows [0,k1) = (con_x, x, alpha, 0-pad)^T,
                                   #                rows [k1,k1+32) = emb[idx]^T
    w1t_ref, b1_ref,               # [32, k1], [32, 1]   layer 1 (rows permuted + zero-padded)
    w2at_ref, w2bt_ref, b2_ref,    # [32, 32], [32, k1], [32, 1]  layer 2 split (h-part, con_x-part)
    w3t_ref, b3_ref,               # [64, 32], [64, 1]
    w4t_ref, b4_ref,               # [32, 64], [32, 1]
    w5t_ref, b5_ref,               # [out_pad, 32], [out_pad, 1]
    out_ref,                       # [out_pad, TM]  (lane-dense along batch)
):
    k1 = act_ref.shape[0] - _HID1          # static
    xin = act_ref[:k1, :]                  # [k1, TM]  (8-aligned sublane slice)
    emb = act_ref[k1:, :]                  # [32, TM]

    # h = relu(W1 @ xin + b1) + emb[idx]                                    -> [32, TM]
    h = jnp.dot(w1t_ref[...], xin, preferred_element_type=jnp.float32) + b1_ref[...]
    h = jnp.maximum(h, 0.0) + emb

    # layer-2 input is cat(h, con_x); realized as two dots (no in-kernel concat).
    # The con_x-part reuses the xin slab: its x/alpha/pad columns in w2bt are zero.
    z = (jnp.dot(w2at_ref[...], h, preferred_element_type=jnp.float32)
         + jnp.dot(w2bt_ref[...], xin, preferred_element_type=jnp.float32)
         + b2_ref[...])
    z = jnp.maximum(z, 0.0)                                                 # [32, TM]

    z = jnp.maximum(
        jnp.dot(w3t_ref[...], z, preferred_element_type=jnp.float32) + b3_ref[...], 0.0)   # [64, TM]
    z = jnp.maximum(
        jnp.dot(w4t_ref[...], z, preferred_element_type=jnp.float32) + b4_ref[...], 0.0)   # [32, TM]
    out = jnp.dot(w5t_ref[...], z, preferred_element_type=jnp.float32) + b5_ref[...]       # [out_pad, TM]

    out_ref[...] = out.astype(out_ref.dtype)


def init_params(key, n_steps, input_dim=1, con_dim=4):
    """Deterministic synthetic parameters (shapes match the torch module).

    Weights are stored [fan_in, fan_out] so y = x @ w + b.
    """
    ks = jax.random.split(key, 6)
    d1_in = input_dim + con_dim + 1          # 6
    d2_in = _HID1 + con_dim                  # 36

    def lin(k, fan_in, fan_out):
        kw, kb = jax.random.split(k)
        s = 1.0 / jnp.sqrt(fan_in)
        w = jax.random.uniform(kw, (fan_in, fan_out), jnp.float32, -s, s)
        b = jax.random.uniform(kb, (1, fan_out), jnp.float32, -s, s)
        return w, b

    w1, b1 = lin(ks[0], d1_in, _HID1)
    emb = jax.random.normal(ks[1], (n_steps, _HID1), jnp.float32)
    w2, b2 = lin(ks[2], d2_in, _HID1)
    w3, b3 = lin(ks[3], _HID1, 64)
    w4, b4 = lin(ks[4], 64, _HID1)
    w5, b5 = lin(ks[5], _HID1, input_dim)
    return dict(w1=w1, b1=b1, emb=emb, w2=w2, b2=b2,
                w3=w3, b3=b3, w4=w4, b4=b4, w5=w5, b5=b5)


def con_backbone_ref(params, x, con_x, alpha, idx):
    """Pure-JAX reference matching the torch forward semantics."""
    h = jnp.concatenate([x, con_x, alpha], axis=1)
    h = jax.nn.relu(h @ params["w1"] + params["b1"])
    h = h + params["emb"][idx]
    z = jnp.concatenate([h, con_x], axis=1)
    z = jax.nn.relu(z @ params["w2"] + params["b2"])
    z = jax.nn.relu(z @ params["w3"] + params["b3"])
    z = jax.nn.relu(z @ params["w4"] + params["b4"])
    return z @ params["w5"] + params["b5"]


@functools.partial(jax.jit, static_argnames=("tm",))
def con_backbone_forward(params, x, con_x, alpha, idx, *, tm=4096):
    """Pallas forward.  x:[B,input_dim] con_x:[B,con_dim] alpha:[B,1] idx:[B] int32."""
    B, input_dim = x.shape                   # static Python ints under jit
    con_dim = con_x.shape[1]

    # Small batches: a one-step Pallas grid is pure launch/pipeline overhead;
    # let XLA fuse the tiny MLP instead.
    if B < _PALLAS_MIN_BATCH:
        return con_backbone_ref(params, x, con_x, alpha, idx)

    d_xin = con_dim + input_dim + 1
    k1 = _round_up(d_xin, 8)                 # layer-1 K, padded to a sublane tile
    out_pad = _round_up(input_dim, 8)        # output rows, padded to a sublane tile
    d_act = k1 + _HID1

    # ---- wrapper-side prep (cheap XLA, hoisted out of the kernel) ----
    # Layer-1 weight: rows permuted to the (con_x, x, alpha) order of the
    # activation slab, transposed, zero-padded to K = k1.
    w1 = params["w1"]                                            # [d_xin, 32], rows (x, con_x, alpha)
    w1_perm = jnp.concatenate(
        [w1[input_dim:input_dim + con_dim], w1[:input_dim],
         w1[input_dim + con_dim:]], axis=0)
    w1t = jnp.zeros((_HID1, k1), jnp.float32).at[:, :d_xin].set(w1_perm.T)
    b1 = params["b1"].reshape(_HID1, 1)

    # Layer-2 weight split: rows [0,32) act on h, rows [32,36) act on con_x.
    w2 = params["w2"]                                            # [36, 32]
    w2at = w2[:_HID1].T                                          # [32, 32]
    w2bt = jnp.zeros((_HID1, k1), jnp.float32).at[:, :con_dim].set(
        w2[_HID1:_HID1 + con_dim].T)
    b2 = params["b2"].reshape(_HID1, 1)

    w3t = params["w3"].T
    b3 = params["b3"].reshape(-1, 1)
    w4t = params["w4"].T
    b4 = params["b4"].reshape(-1, 1)
    w5t = jnp.zeros((out_pad, _HID1), jnp.float32).at[:input_dim, :].set(params["w5"].T)
    b5 = jnp.zeros((out_pad, 1), jnp.float32).at[:input_dim, :].set(
        params["b5"].reshape(input_dim, 1))

    # Consolidated transposed activation slab [k1 + 32, B]:
    #   rows [0, con_dim)      con_x^T
    #   rows [con_dim, d_xin)  x^T, alpha^T
    #   rows [d_xin, k1)       zeros (sublane padding)
    #   rows [k1, k1 + 32)     emb[idx]^T           (gather hoisted out of the kernel)
    emb_rows = params["emb"][idx]                                # [B, 32]
    act_t = jnp.concatenate(
        [con_x.T, x.T, alpha.T,
         jnp.zeros((k1 - d_xin, B), jnp.float32),
         emb_rows.T], axis=0)                                    # [d_act, B]

    # ---- batch tiling (batch lives on the lane axis) ----
    ntiles = -(-B // tm)
    if ntiles == 1 and B >= 1024:
        ntiles = 2                      # give megacore (v7x) two tiles even when B <= tm
    tm_eff = _round_up(-(-B // ntiles), 128)   # lane-axis tile: multiple of 128
    bp = ntiles * tm_eff
    if bp != B:
        act_t = jnp.pad(act_t, ((0, 0), (0, bp - B)))
    grid = (ntiles,)

    def const_spec(shape):
        return pl.BlockSpec(shape, lambda i: (0, 0))             # stays VMEM-resident

    out_t = pl.pallas_call(
        _con_backbone_kernel,
        out_shape=jax.ShapeDtypeStruct((out_pad, bp), jnp.float32),
        grid=grid,
        in_specs=[
            pl.BlockSpec((d_act, tm_eff), lambda i: (0, i)),
            const_spec((_HID1, k1)), const_spec((_HID1, 1)),
            const_spec((_HID1, _HID1)), const_spec((_HID1, k1)), const_spec((_HID1, 1)),
            const_spec((64, _HID1)), const_spec((64, 1)),
            const_spec((_HID1, 64)), const_spec((_HID1, 1)),
            const_spec((out_pad, _HID1)), const_spec((out_pad, 1)),
        ],
        out_specs=pl.BlockSpec((out_pad, tm_eff), lambda i: (0, i)),
        compiler_params=pltpu.CompilerParams(
            dimension_semantics=("parallel",),
            vmem_limit_bytes=32 * 1024 * 1024),
    )(act_t, w1t, b1, w2at, w2bt, b2, w3t, b3, w4t, b4, w5t, b5)

    return out_t[:input_dim, :B].T


if __name__ == "__main__":
    key = jax.random.PRNGKey(0)
    kp, kx, kc, ka, ki = jax.random.split(key, 5)

    n_steps = 16
    input_dim = 1
    con_dim = 4

    params = init_params(kp, n_steps, input_dim=input_dim, con_dim=con_dim)

    # --- Pallas path: multi-tile grid with a ragged batch (exercises padding) ---
    B = 300
    x = jax.random.normal(kx, (B, input_dim), jnp.float32)
    con_x = jax.random.normal(kc, (B, con_dim), jnp.float32)
    alpha = jax.random.uniform(ka, (B, 1), jnp.float32)
    idx = jax.random.randint(ki, (B,), 0, n_steps, jnp.int32)

    out = jax.block_until_ready(con_backbone_forward(params, x, con_x, alpha, idx, tm=128))
    ref = con_backbone_ref(params, x, con_x, alpha, idx)
    assert out.shape == (B, input_dim)
    # Tolerance covers possible reduced-precision f32 MXU passes on real hardware;
    # interpret-mode / full-f32 paths agree to ~1e-6.
    assert jnp.allclose(out, ref, atol=1e-3, rtol=1e-2), "pallas path mismatch vs reference"

    # --- small-batch fallback path (B below the Pallas threshold) ---
    Bs = 8
    out_s = jax.block_until_ready(
        con_backbone_forward(params, x[:Bs], con_x[:Bs], alpha[:Bs], idx[:Bs]))
    ref_s = con_backbone_ref(params, x[:Bs], con_x[:Bs], alpha[:Bs], idx[:Bs])
    assert out_s.shape == (Bs, input_dim)
    assert jnp.allclose(out_s, ref_s, atol=1e-5, rtol=1e-5), "fallback path mismatch"

    print("KERNEL_OK")
</pallas_src>

<mosaic_0001>
module attributes {stable_mosaic.version = 11 : i64} {
  func.func @_con_backbone_kernel(%arg0: i32, %arg1: memref<40x128xf32, #tpu.memory_space<vmem>>, %arg2: memref<32x8xf32, #tpu.memory_space<vmem>>, %arg3: memref<32x1xf32, #tpu.memory_space<vmem>>, %arg4: memref<32x32xf32, #tpu.memory_space<vmem>>, %arg5: memref<32x8xf32, #tpu.memory_space<vmem>>, %arg6: memref<32x1xf32, #tpu.memory_space<vmem>>, %arg7: memref<64x32xf32, #tpu.memory_space<vmem>>, %arg8: memref<64x1xf32, #tpu.memory_space<vmem>>, %arg9: memref<32x64xf32, #tpu.memory_space<vmem>>, %arg10: memref<32x1xf32, #tpu.memory_space<vmem>>, %arg11: memref<8x32xf32, #tpu.memory_space<vmem>>, %arg12: memref<8x1xf32, #tpu.memory_space<vmem>>, %arg13: memref<8x128xf32, #tpu.memory_space<vmem>>) attributes {dimension_semantics = [#tpu.dimension_semantics<parallel>], iteration_bounds = array<i64: 3>, scalar_prefetch = 0 : i64, scratch_operands = 0 : i64, tpu.core_type = #tpu.core_type<tc>, window_params = [{transform_indices = @transform_0, window_bounds = array<i64: 40, 128>}, {pipeline_mode = #tpu.pipeline_mode<synchronous>, transform_indices = @transform_1, window_bounds = array<i64: 32, 8>}, {pipeline_mode = #tpu.pipeline_mode<synchronous>, transform_indices = @transform_2, window_bounds = array<i64: 32, 1>}, {pipeline_mode = #tpu.pipeline_mode<synchronous>, transform_indices = @transform_3, window_bounds = array<i64: 32, 32>}, {pipeline_mode = #tpu.pipeline_mode<synchronous>, transform_indices = @transform_4, window_bounds = array<i64: 32, 8>}, {pipeline_mode = #tpu.pipeline_mode<synchronous>, transform_indices = @transform_5, window_bounds = array<i64: 32, 1>}, {pipeline_mode = #tpu.pipeline_mode<synchronous>, transform_indices = @transform_6, window_bounds = array<i64: 64, 32>}, {pipeline_mode = #tpu.pipeline_mode<synchronous>, transform_indices = @transform_7, window_bounds = array<i64: 64, 1>}, {pipeline_mode = #tpu.pipeline_mode<synchronous>, transform_indices = @transform_8, window_bounds = array<i64: 32, 64>}, {pipeline_mode = #tpu.pipeline_mode<synchronous>, transform_indices = @transform_9, window_bounds = array<i64: 32, 1>}, {pipeline_mode = #tpu.pipeline_mode<synchronous>, transform_indices = @transform_10, window_bounds = array<i64: 8, 32>}, {pipeline_mode = #tpu.pipeline_mode<synchronous>, transform_indices = @transform_11, window_bounds = array<i64: 8, 1>}, {transform_indices = @transform_12, window_bounds = array<i64: 8, 128>}]} {
    %c0 = arith.constant 0 : index
    %c0_0 = arith.constant 0 : index
    %0 = vector.load %arg1[%c0, %c0_0] : memref<40x128xf32, #tpu.memory_space<vmem>>, vector<8x128xf32>
    %c8 = arith.constant 8 : index
    %c0_1 = arith.constant 0 : index
    %1 = vector.load %arg1[%c8, %c0_1] : memref<40x128xf32, #tpu.memory_space<vmem>>, vector<32x128xf32>
    %c0_2 = arith.constant 0 : index
    %c0_3 = arith.constant 0 : index
    %2 = vector.load %arg2[%c0_2, %c0_3] : memref<32x8xf32, #tpu.memory_space<vmem>>, vector<32x8xf32>
    %cst = arith.constant dense<0.000000e+00> : vector<32x128xf32>
    %3 = tpu.matmul %2, %0, %cst {dimension_numbers = #tpu.dot_dimension_numbers<[1], [0], [0], [1], [0, 0, 1, 1], [], []>} : vector<32x8xf32>, vector<8x128xf32>, vector<32x128xf32> -> vector<32x128xf32>
    %c0_4 = arith.constant 0 : index
    %c0_5 = arith.constant 0 : index
    %4 = vector.load %arg3[%c0_4, %c0_5] : memref<32x1xf32, #tpu.memory_space<vmem>>, vector<32x1xf32>
    %5 = vector.broadcast %4 : vector<32x1xf32> to vector<32x128xf32>
    %6 = arith.addf %3, %5 : vector<32x128xf32>
    %cst_6 = arith.constant 0.000000e+00 : f32
    %7 = vector.broadcast %cst_6 : f32 to vector<32x128xf32>
    %8 = arith.maximumf %6, %7 : vector<32x128xf32>
    %9 = arith.addf %8, %1 : vector<32x128xf32>
    %c0_7 = arith.constant 0 : index
    %c0_8 = arith.constant 0 : index
    %10 = vector.load %arg4[%c0_7, %c0_8] : memref<32x32xf32, #tpu.memory_space<vmem>>, vector<32x32xf32>
    %cst_9 = arith.constant dense<0.000000e+00> : vector<32x128xf32>
    %11 = tpu.matmul %10, %9, %cst_9 {dimension_numbers = #tpu.dot_dimension_numbers<[1], [0], [0], [1], [0, 0, 1, 1], [], []>} : vector<32x32xf32>, vector<32x128xf32>, vector<32x128xf32> -> vector<32x128xf32>
    %c0_10 = arith.constant 0 : index
    %c0_11 = arith.constant 0 : index
    %12 = vector.load %arg5[%c0_10, %c0_11] : memref<32x8xf32, #tpu.memory_space<vmem>>, vector<32x8xf32>
    %cst_12 = arith.constant dense<0.000000e+00> : vector<32x128xf32>
    %13 = tpu.matmul %12, %0, %cst_12 {dimension_numbers = #tpu.dot_dimension_numbers<[1], [0], [0], [1], [0, 0, 1, 1], [], []>} : vector<32x8xf32>, vector<8x128xf32>, vector<32x128xf32> -> vector<32x128xf32>
    %14 = arith.addf %11, %13 : vector<32x128xf32>
    %c0_13 = arith.constant 0 : index
    %c0_14 = arith.constant 0 : index
    %15 = vector.load %arg6[%c0_13, %c0_14] : memref<32x1xf32, #tpu.memory_space<vmem>>, vector<32x1xf32>
    %16 = vector.broadcast %15 : vector<32x1xf32> to vector<32x128xf32>
    %17 = arith.addf %14, %16 : vector<32x128xf32>
    %cst_15 = arith.constant 0.000000e+00 : f32
    %18 = vector.broadcast %cst_15 : f32 to vector<32x128xf32>
    %19 = arith.maximumf %17, %18 : vector<32x128xf32>
    %c0_16 = arith.constant 0 : index
    %c0_17 = arith.constant 0 : index
    %20 = vector.load %arg7[%c0_16, %c0_17] : memref<64x32xf32, #tpu.memory_space<vmem>>, vector<64x32xf32>
    %cst_18 = arith.constant dense<0.000000e+00> : vector<64x128xf32>
    %21 = tpu.matmul %20, %19, %cst_18 {dimension_numbers = #tpu.dot_dimension_numbers<[1], [0], [0], [1], [0, 0, 1, 1], [], []>} : vector<64x32xf32>, vector<32x128xf32>, vector<64x128xf32> -> vector<64x128xf32>
    %c0_19 = arith.constant 0 : index
    %c0_20 = arith.constant 0 : index
    %22 = vector.load %arg8[%c0_19, %c0_20] : memref<64x1xf32, #tpu.memory_space<vmem>>, vector<64x1xf32>
    %23 = vector.broadcast %22 : vector<64x1xf32> to vector<64x128xf32>
    %24 = arith.addf %21, %23 : vector<64x128xf32>
    %cst_21 = arith.constant 0.000000e+00 : f32
    %25 = vector.broadcast %cst_21 : f32 to vector<64x128xf32>
    %26 = arith.maximumf %24, %25 : vector<64x128xf32>
    %c0_22 = arith.constant 0 : index
    %c0_23 = arith.constant 0 : index
    %27 = vector.load %arg9[%c0_22, %c0_23] : memref<32x64xf32, #tpu.memory_space<vmem>>, vector<32x64xf32>
    %cst_24 = arith.constant dense<0.000000e+00> : vector<32x128xf32>
    %28 = tpu.matmul %27, %26, %cst_24 {dimension_numbers = #tpu.dot_dimension_numbers<[1], [0], [0], [1], [0, 0, 1, 1], [], []>} : vector<32x64xf32>, vector<64x128xf32>, vector<32x128xf32> -> vector<32x128xf32>
    %c0_25 = arith.constant 0 : index
    %c0_26 = arith.constant 0 : index
    %29 = vector.load %arg10[%c0_25, %c0_26] : memref<32x1xf32, #tpu.memory_space<vmem>>, vector<32x1xf32>
    %30 = vector.broadcast %29 : vector<32x1xf32> to vector<32x128xf32>
    %31 = arith.addf %28, %30 : vector<32x128xf32>
    %cst_27 = arith.constant 0.000000e+00 : f32
    %32 = vector.broadcast %cst_27 : f32 to vector<32x128xf32>
    %33 = arith.maximumf %31, %32 : vector<32x128xf32>
    %c0_28 = arith.constant 0 : index
    %c0_29 = arith.constant 0 : index
    %34 = vector.load %arg11[%c0_28, %c0_29] : memref<8x32xf32, #tpu.memory_space<vmem>>, vector<8x32xf32>
    %cst_30 = arith.constant dense<0.000000e+00> : vector<8x128xf32>
    %35 = tpu.matmul %34, %33, %cst_30 {dimension_numbers = #tpu.dot_dimension_numbers<[1], [0], [0], [1], [0, 0, 1, 1], [], []>} : vector<8x32xf32>, vector<32x128xf32>, vector<8x128xf32> -> vector<8x128xf32>
    %c0_31 = arith.constant 0 : index
    %c0_32 = arith.constant 0 : index
    %36 = vector.load %arg12[%c0_31, %c0_32] : memref<8x1xf32, #tpu.memory_space<vmem>>, vector<8x1xf32>
    %37 = vector.broadcast %36 : vector<8x1xf32> to vector<8x128xf32>
    %38 = arith.addf %35, %37 : vector<8x128xf32>
    %c0_33 = arith.constant 0 : index
    %c0_34 = arith.constant 0 : index
    %39 = vector.load %arg13[%c0_33, %c0_34] : memref<8x128xf32, #tpu.memory_space<vmem>>, vector<8x128xf32>
    tpu.vector_store %arg13[%c0_33, %c0_34], %38 {strides = array<i32>} : memref<8x128xf32, #tpu.memory_space<vmem>>, vector<8x128xf32>,
    return
  }
  func.func @transform_0(%arg0: i32) -> (i32, i32) {
    %c0_i32 = arith.constant 0 : i32
    %c0_i32_0 = arith.constant 0 : i32
    return %c0_i32, %arg0 : i32, i32
  }
  func.func @transform_1(%arg0: i32) -> (i32, i32) {
    %c0_i32 = arith.constant 0 : i32
    %c0_i32_0 = arith.constant 0 : i32
    %c0_i32_1 = arith.constant 0 : i32
    return %c0_i32, %c0_i32_0 : i32, i32
  }
  func.func @transform_2(%arg0: i32) -> (i32, i32) {
    %c0_i32 = arith.constant 0 : i32
    %c0_i32_0 = arith.constant 0 : i32
    %c0_i32_1 = arith.constant 0 : i32
    return %c0_i32, %c0_i32_0 : i32, i32
  }
  func.func @transform_3(%arg0: i32) -> (i32, i32) {
    %c0_i32 = arith.constant 0 : i32
    %c0_i32_0 = arith.constant 0 : i32
    %c0_i32_1 = arith.constant 0 : i32
    return %c0_i32, %c0_i32_0 : i32, i32
  }
  func.func @transform_4(%arg0: i32) -> (i32, i32) {
    %c0_i32 = arith.constant 0 : i32
    %c0_i32_0 = arith.constant 0 : i32
    %c0_i32_1 = arith.constant 0 : i32
    return %c0_i32, %c0_i32_0 : i32, i32
  }
  func.func @transform_5(%arg0: i32) -> (i32, i32) {
    %c0_i32 = arith.constant 0 : i32
    %c0_i32_0 = arith.constant 0 : i32
    %c0_i32_1 = arith.constant 0 : i32
    return %c0_i32, %c0_i32_0 : i32, i32
  }
  func.func @transform_6(%arg0: i32) -> (i32, i32) {
    %c0_i32 = arith.constant 0 : i32
    %c0_i32_0 = arith.constant 0 : i32
    %c0_i32_1 = arith.constant 0 : i32
    return %c0_i32, %c0_i32_0 : i32, i32
  }
  func.func @transform_7(%arg0: i32) -> (i32, i32) {
    %c0_i32 = arith.constant 0 : i32
    %c0_i32_0 = arith.constant 0 : i32
    %c0_i32_1 = arith.constant 0 : i32
    return %c0_i32, %c0_i32_0 : i32, i32
  }
  func.func @transform_8(%arg0: i32) -> (i32, i32) {
    %c0_i32 = arith.constant 0 : i32
    %c0_i32_0 = arith.constant 0 : i32
    %c0_i32_1 = arith.constant 0 : i32
    return %c0_i32, %c0_i32_0 : i32, i32
  }
  func.func @transform_9(%arg0: i32) -> (i32, i32) {
    %c0_i32 = arith.constant 0 : i32
    %c0_i32_0 = arith.constant 0 : i32
    %c0_i32_1 = arith.constant 0 : i32
    return %c0_i32, %c0_i32_0 : i32, i32
  }
  func.func @transform_10(%arg0: i32) -> (i32, i32) {
    %c0_i32 = arith.constant 0 : i32
    %c0_i32_0 = arith.constant 0 : i32
    %c0_i32_1 = arith.constant 0 : i32
    return %c0_i32, %c0_i32_0 : i32, i32
  }
  func.func @transform_11(%arg0: i32) -> (i32, i32) {
    %c0_i32 = arith.constant 0 : i32
    %c0_i32_0 = arith.constant 0 : i32
    %c0_i32_1 = arith.constant 0 : i32
    return %c0_i32, %c0_i32_0 : i32, i32
  }
  func.func @transform_12(%arg0: i32) -> (i32, i32) {
    %c0_i32 = arith.constant 0 : i32
    %c0_i32_0 = arith.constant 0 : i32
    return %c0_i32, %arg0 : i32, i32
  }
}

</mosaic_0001>

<bundles_post_ra>
// kernel: con_backbone_forward.1
= control target key start
LH: loop header
LB: loop body
LE: loop exit
PB: predicated region body
PF: predicated region fallthrough
CT: control target
= control target key end

     0   :  { %s1630_s21 = smov 0   ;;  %s1632_s22 = smov 0   ;;  %s1854_s0 = inlined_call_operand.vmem [shape: f32[40,384], index: 0, kind: input, shape index: {}]   ;;  %s1855_s1 = inlined_call_operand.vmem [shape: f32[32,8], index: 1, kind: input, shape index: {}]   ;;  %s1856_s2 = inlined_call_operand.vmem [shape: f32[32,1], index: 2, kind: input, shape index: {}]   ;;  %s1857_s3 = inlined_call_operand.vmem [shape: f32[32,32], index: 3, kind: input, shape index: {}]   ;;  %s1858_s4 = inlined_call_operand.vmem [shape: f32[32,8], index: 4, kind: input, shape index: {}]   ;;  %s1859_s5 = inlined_call_operand.vmem [shape: f32[32,1], index: 5, kind: input, shape index: {}]   ;;  %s1860_s6 = inlined_call_operand.vmem [shape: f32[64,32], index: 6, kind: input, shape index: {}]   ;;  %s1861_s7 = inlined_call_operand.vmem [shape: f32[64,1], index: 7, kind: input, shape index: {}]   ;;  %s1862_s8 = inlined_call_operand.vmem [shape: f32[32,64], index: 8, kind: input, shape index: {}]   ;;  %s1863_s9 = inlined_call_operand.vmem [shape: f32[32,1], index: 9, kind: input, shape index: {}]   ;;  %s1864_s10 = inlined_call_operand.vmem [shape: f32[8,32], index: 10, kind: input, shape index: {}]   ;;  %s1865_s11 = inlined_call_operand.vmem [shape: f32[8,1], index: 11, kind: input, shape index: {}]   ;;  %s1866_s12 = inlined_call_operand.vmem [shape: f32[8,384], index: 12, kind: output, shape index: {}]  }
   0x1   :  { %s1634_s23 = smov 0  }
   0x2 LB: > { %s1299_s24 = sadd.s32 4294967295, %s1559_s23   ;;  %s1647_s25 = sadd.s32 1, %s1559_s23   ;;  %s1559_s23 = sphi %s1634_s23, %s1869_s23   ;;  %s1555_s22 = sphi %s1632_s22, %s1868_s22   ;;  %s1551_s21 = sphi %s1630_s21, %s1867_s21  }
   0x3   : > { %s26_s26 = ssub.s32 %s1559_s23, %s1647_s25  ;;  %s29_s27 = sadd.s32 1, %s1555_s22 }
   0x4   : > { %p27_p0 = scmp.eq.s32.totalorder %s26_s26, 0  ;;  %p36_p1 = scmp.ne.s32.totalorder %s1555_s22, %s1551_s21 }
   0x5   : > { %p37_p2 = scmp.eq.s32.totalorder %s1559_s23, 0  ;;  %p1302_p4 = scmp.ge.s32.totalorder %s1559_s23, 3 }
   0x6   : > { %s1656_s28 = scalar_select %p27_p0, %s1555_s22, %s29_s27  }
   0x7   : > { %p38_p3 = por %p37_p2, %p36_p1  ;;  %352 = sbr.rel (%p1302_p4) target bundleno = 21 (0x15), region = 60 }
   0xe   : > { %355 = sbr.rel (!%p38_p3) target bundleno = 21 (0x15), region = 64  ;;  %s357_s29 = sand.u32 (%p38_p3), 1, %s1555_s22  }
   0xf   : > { %s1303_s30 = sshll.u32 (%p38_p3), %s1559_s23, 3  ;;  %s1505_s13 = smul.u32 (%p38_p3), 40, %s357_s29 }
  0x10   : > { %s361_s16 = scalar_lea.vmem (%p38_p3), %s1854_s0, %s1303_s30 }
  0x11   : > { %v397_v0 = vld [vmem:[%s361_s16] sm:$0xff] (%p38_p3)  ;;  %v399_v1 = vld [vmem:[%s361_s16 + $0x18] sm:$0xff] (%p38_p3)  ;;  %v401_v2 = vld [vmem:[%s361_s16 + $0x30] sm:$0xff] (%p38_p3)  ;;  %s359_s17 = scalar_lea.vmem (%p38_p3), [#allocation2], %s1505_s13 }
  0x12   : > { %v403_v3 = vld [vmem:[%s361_s16 + $0x48] sm:$0xff] (%p38_p3)  ;;  %v405_v4 = vld [vmem:[%s361_s16 + $0x60] sm:$0xff] (%p38_p3)  ;;  %398 = vst [vmem:[%s359_s17] sm:$0xff] (%p38_p3), %v397_v0  ;;  %400 = vst [vmem:[%s359_s17 + $0x8] sm:$0xff] (%p38_p3), %v399_v1 }
  0x13   : > { %402 = vst [vmem:[%s359_s17 + $0x10] sm:$0xff] (%p38_p3), %v401_v2  ;;  %404 = vst [vmem:[%s359_s17 + $0x18] sm:$0xff] (%p38_p3), %v403_v3 }
  0x14   : > { %406 = vst [vmem:[%s359_s17 + $0x20] sm:$0xff] (%p38_p3), %v405_v4 }
  0x15 PF: > { %p1304_p5 = scmp.ge.s32.totalorder %s1559_s23, 1  ;;  %p411_p6 = scmp.lt.s32.totalorder %s1559_s23, 4 }
  0x17   : > { %p412_p7 = pnand %p1304_p5, %p411_p6 }
  0x18   : > { %s418_s18 = sand.u32 (!%p412_p7), 1, %s1551_s21   ;;  %v467_v5 = vld [vmem:[%s1855_s1] sm:$0xff] (!%p412_p7)  ;;  %vm495_vm0 = vcmask (!%p412_p7), 64512   ;;  %v1561_v6 = vmov (!%p412_p7), 0   ;;  %v473_v8 = vld [vmem:[%s1856_s2 + $0x10] sm:$0xff] (!%p412_p7)  ;;  %v472_v9 = vld [vmem:[%s1856_s2 + $0x8] sm:$0xff] (!%p412_p7) }
  0x19   : > { %415 = sbr.rel (%p412_p7) target bundleno = 1164 (0x48c), region = 102  ;;  %1382 = vmatprep.mubr.msk.f32.mxu1 (!%p412_p7), %vm495_vm0, %v467_v5  ;;  %1535 = vset.pattern.permute.xlu0 (!%p412_p7), %v1561_v6  ;;  %v471_v7 = vld [vmem:[%s1856_s2] sm:$0xff] (!%p412_p7)  ;;  %v468_v11 = vld [vmem:[%s1855_s1 + $0x8] sm:$0xff] (!%p412_p7)  ;;  %v474_v12 = vld [vmem:[%s1856_s2 + $0x18] sm:$0xff] (!%p412_p7)  ;;  %vm706_vm1 = vcmask (!%p412_p7), 261120   ;;  %vm1057_vm2 = vcmask (!%p412_p7), 523264  }
  0x1a   : > { %s1506_s26 = smul.u32 (!%p412_p7), 40, %s418_s18  ;;  %477 = vperm.xlu0 (!%p412_p7), %1535, %v471_v7   ;;  %1536 = vset.pattern.permute.xlu1 (!%p412_p7), %v1561_v6  ;;  %v469_v13 = vld [vmem:[%s1855_s1 + $0x10] sm:$0xff] (!%p412_p7)  ;;  %v804_v14 = vld [vmem:[%s1859_s5] sm:$0xff] (!%p412_p7)  ;;  %v470_v15 = vld [vmem:[%s1855_s1 + $0x18] sm:$0xff] (!%p412_p7)  ;;  %vm1563_vm3 = vmmov (!%p412_p7), 0   ;;  %p458_p8 = scmp.lt.s32.totalorder (!%p412_p7), %s1299_s24, 2 }
  0x1b   : > { %487 = vperm.xlu1 (!%p412_p7), %1536, %v473_v8   ;;  %v805_v16 = vld [vmem:[%s1859_s5 + $0x8] sm:$0xff] (!%p412_p7)  ;;  %v806_v17 = vld [vmem:[%s1859_s5 + $0x10] sm:$0xff] (!%p412_p7)  ;;  %v807_v18 = vld [vmem:[%s1859_s5 + $0x18] sm:$0xff] (!%p412_p7) }
  0x1c   : > { %s1680_s15 = scalar_lea.vmem (!%p412_p7), [#allocation2], %s1506_s26  ;;  %v844_v19 = vld [vmem:[%s1861_s7] sm:$0xff] (!%p412_p7)  ;;  %v845_v20 = vld [vmem:[%s1861_s7 + $0x8] sm:$0xff] (!%p412_p7)  ;;  %v846_v21 = vld [vmem:[%s1861_s7 + $0x10] sm:$0xff] (!%p412_p7) }
  0x1d   : > { %v462_v10 = vld [vmem:[%s1680_s15] sm:$0xff] (!%p412_p7)  ;;  %v847_v22 = vld [vmem:[%s1861_s7 + $0x18] sm:$0xff] (!%p412_p7)  ;;  %v850_v25 = vld [vmem:[%s1861_s7 + $0x30] sm:$0xff] (!%p412_p7) }
  0x1e   : > { %1380 = vmatprep.subr.mxu1 (!%p412_p7), %v462_v10  ;;  %482 = vperm.xlu0 (!%p412_p7), %1535, %v472_v9   ;;  %v848_v23 = vld [vmem:[%s1861_s7 + $0x20] sm:$0xff] (!%p412_p7)  ;;  %v849_v24 = vld [vmem:[%s1861_s7 + $0x28] sm:$0xff] (!%p412_p7)  ;;  %v851_v26 = vld [vmem:[%s1861_s7 + $0x38] sm:$0xff] (!%p412_p7) }
  0x1f   : > { %1381 = vmatpush3.msra.mxu1 (!%p412_p7), %v462_v10  ;;  %492 = vperm.xlu1 (!%p412_p7), %1536, %v474_v12   ;;  %v1033_v27 = vld [vmem:[%s1863_s9] sm:$0xff] (!%p412_p7)  ;;  %v1034_v28 = vld [vmem:[%s1863_s9 + $0x8] sm:$0xff] (!%p412_p7)  ;;  %v1035_v29 = vld [vmem:[%s1863_s9 + $0x10] sm:$0xff] (!%p412_p7) }
  0x20   : > { %1383 = vmatmul.mubr.msk.f32.vlgmr.msra.gmra.mrb[0].mxu1 %vm495_vm0, %v468_v11  ;;  %1388 = vmatprep.subr.mxu1 %v462_v10  ;;  %v1036_v30 = vld [vmem:[%s1863_s9 + $0x18] sm:$0xff]  ;;  %v1160_v31 = vld [vmem:[%s1865_s11] sm:$0xff]  ;;  %v606_v33 = vld [vmem:[%s1858_s4 + $0x8] sm:$0xff]  ;;  %s1871_s24 = smov (!%p458_p8, %s1299_s24), 2 }
  0x21   : > { %1385 = vmatprep.mubr.msk.f32.mxu1 %vm495_vm0, %v469_v13  ;;  %1389 = vmatpush3.msra.mxu1 %v462_v10  ;;  %v605_v32 = vld [vmem:[%s1858_s4] sm:$0xff]  ;;  %v607_v34 = vld [vmem:[%s1858_s4 + $0x10] sm:$0xff]  ;;  %v608_v35 = vld [vmem:[%s1858_s4 + $0x18] sm:$0xff]  ;;  %s1305_s13 = sshll.u32 %s1871_s24, 3 }
  0x22   : > { %810 = vperm.xlu0 %1535, %v804_v14   ;;  %v601_v36 = vld [vmem:[%s1857_s3] sm:$0xff]  ;;  %v464_v43 = vld [vmem:[%s1680_s15 + $0x10] sm:$0xff]  ;;  %v463_v46 = vld [vmem:[%s1680_s15 + $0x8] sm:$0xff]  ;;  %s461_s16 = scalar_lea.vmem %s1866_s12, %s1305_s13 }
  0x23   : > { %815 = vperm.xlu1 %1536, %v805_v16   ;;  %v466_v54 = vld [vmem:[%s1680_s15 + $0x20] sm:$0xff]  ;;  %v465_v57 = vld [vmem:[%s1680_s15 + $0x18] sm:$0xff]  ;;  %v603_v0 = vld [vmem:[%s1857_s3 + $0x10] sm:$0xff] }
  0x24   : > { %1386 = vmatmul.mubr.msk.f32.gmra.mrb[2].mxu1 %vm495_vm0, %v470_v15  ;;  %v602_v63 = vld [vmem:[%s1857_s3 + $0x8] sm:$0xff]  ;;  %v604_v1 = vld [vmem:[%s1857_s3 + $0x18] sm:$0xff]  ;;  %v836_v2 = vld [vmem:[%s1860_s6] sm:$0xff] }
  0x25   : > { %1390 = vmatprep.mubr.msk.f32.mxu1 %vm495_vm0, %v605_v32  ;;  %1418 = vmatprep.mubr.msk.f32.mxu0 %vm706_vm1, %v836_v2  ;;  %v1031_v2 = vld [vmem:[%s1862_s8 + $0x10] sm:$0xff] }
  0x26   : > { %820 = vperm.xlu0 %1535, %v806_v17  }
  0x27   : > { %825 = vperm.xlu1 %1536, %v807_v18  }
  0x28   : > { %1391 = vmatmul.mubr.msk.f32.vlgmr.msra.gmra.mrb[4].mxu1 %vm495_vm0, %v606_v33 }
  0x29   : > { %1393 = vmatprep.mubr.msk.f32.mxu1 %vm495_vm0, %v607_v34 }
  0x2a   : > { %854 = vperm.xlu0 %1535, %v844_v19  }
  0x2b   : > { %859 = vperm.xlu1 %1536, %v845_v20  }
  0x2c   : > { %1394 = vmatmul.mubr.msk.f32.gmra.mrb[6].mxu1 %vm495_vm0, %v608_v35 }
  0x2d   : > { %1404 = vmatprep.mubr.msk.f32.mxu1 %vm706_vm1, %v601_v36 }
  0x2e   : > { %864 = vperm.xlu0 %1535, %v846_v21   ;;  %v837_v21 = vld [vmem:[%s1860_s6 + $0x8] sm:$0xff] }
  0x2f   : > { %869 = vperm.xlu1 %1536, %v847_v22   ;;  %v838_v22 = vld [vmem:[%s1860_s6 + $0x10] sm:$0xff] }
  0x32   : > { %874 = vperm.xlu0 %1535, %v848_v23   ;;  %v839_v23 = vld [vmem:[%s1860_s6 + $0x18] sm:$0xff] }
  0x33   : > { %879 = vperm.xlu1 %1536, %v849_v24   ;;  %v840_v24 = vld [vmem:[%s1860_s6 + $0x20] sm:$0xff] }
  0x36   : > { %884 = vperm.xlu0 %1535, %v850_v25   ;;  %v841_v25 = vld [vmem:[%s1860_s6 + $0x28] sm:$0xff] }
  0x37   : > { %889 = vperm.xlu1 %1536, %v851_v26   ;;  %v842_v26 = vld [vmem:[%s1860_s6 + $0x30] sm:$0xff] }
  0x3a   : > { %1039 = vperm.xlu0 %1535, %v1033_v27   ;;  %v843_v27 = vld [vmem:[%s1860_s6 + $0x38] sm:$0xff] }
  0x3b   : > { %1044 = vperm.xlu1 %1536, %v1034_v28   ;;  %v1029_v28 = vld [vmem:[%s1862_s8] sm:$0xff] }
  0x3e   : > { %1049 = vperm.xlu0 %1535, %v1035_v29  }
  0x3f   : > { %1054 = vperm.xlu1 %1536, %v1036_v30  }
  0x42   : > { %1163 = vperm.xlu0 %1535, %v1160_v31  }
  0x99   : > { %v478_v37 = vpop.permute.xlu0 %477 }
  0x9a   : > { %v488_v38 = vpop.permute.xlu1 %487 }
  0x9d   : > { %v483_v39 = vpop.permute.xlu0 %482 }
  0x9e   : > { %v493_v47 = vpop.permute.xlu1 %492 }
  0xa1   : > { %v811_v4 = vpop.permute.xlu0 %810 }
  0xa2   : > { %v816_v3 = vpop.permute.xlu1 %815 }
  0xa5   : > { %v821_v13 = vpop.permute.xlu0 %820 }
  0xa6   : > { %v826_v10 = vpop.permute.xlu1 %825 }
  0xa9   : > { %v855_v30 = vpop.permute.xlu0 %854 }
  0xaa   : > { %v860_v29 = vpop.permute.xlu1 %859 }
  0xad   : > { %v865_v33 = vpop.permute.xlu0 %864 }
  0xae   : > { %v870_v31 = vpop.permute.xlu1 %869 }
  0xf3   : > { %v1384_v40 = vpop.f32.mrb[0].mxu1 }
  0xf4   : > { %v580_v41 = vadd.f32 %v1384_v40, %v483_v39  ;;  %v574_v42 = vpop.f32.mrb[1].mxu1 }
  0xf5   : > { %v575_v44 = vadd.f32 %v574_v42, %v478_v37  ;;  %v880_v42 = vpop.permute.xlu1 %879 }
  0xf6   : > { %v594_v45 = vmax.f32 %v580_v41, 0.0 }
  0xf7   : > { %v593_v48 = vmax.f32 %v575_v44, 0.0  ;;  %v1387_v49 = vpop.f32.mrb[2].mxu1 }
  0xf8   : > { %v598_v50 = vadd.f32 %v594_v45, %v464_v43  ;;  %v590_v51 = vadd.f32 %v1387_v49, %v493_v47  ;;  %v584_v52 = vpop.f32.mrb[3].mxu1  ;;  %v875_v45 = vpop.permute.xlu0 %874 }
  0xf9   : > { %v597_v53 = vadd.f32 %v593_v48, %v463_v46  ;;  %v585_v55 = vadd.f32 %v584_v52, %v488_v38 }
  0xfa   : > { %v596_v56 = vmax.f32 %v590_v51, 0.0 }
  0xfb   : > { %v595_v58 = vmax.f32 %v585_v55, 0.0  ;;  %v1463_v59 = vpack.c.bf16 %v598_v50, %v597_v53 }
  0xfc   : > { %v600_v60 = vadd.f32 %v596_v56, %v466_v54  ;;  %v890_v54 = vpop.permute.xlu1 %889 }
  0xfd   : > { %v599_v61 = vadd.f32 %v595_v58, %v465_v57  ;;  %1464 = vmatprep.subr.bf16.mxu1 %v1463_v59  ;;  %v885_v57 = vpop.permute.xlu0 %884 }
  0xfe   : > { %1466 = vmatpush3.bf16.msra.mxu1 %v1463_v59 }
  0xff   : > { %v1467_v62 = vpack.c.bf16 %v600_v60, %v599_v61 }
 0x101   : > { %1468 = vmatprep.subr.bf16.mxu1 %v1467_v62 }
 0x102   : > { %1470 = vmatpush3.bf16.msra.mxu1 %v1467_v62 }
 0x105   : > { %1405 = vmatmul.mubr.msk.f32.vlgmr.msra.gmra.mrb[4].mxu1 %vm706_vm1, %v602_v63 }
 0x106   : > { %1407 = vmatprep.mubr.msk.f32.mxu1 %vm706_vm1, %v603_v0 }
 0x109   : > { %1408 = vmatmul.mubr.msk.f32.gmra.mrb[6].mxu1 %vm706_vm1, %v604_v1  ;;  %v1030_v1 = vld [vmem:[%s1862_s8 + $0x8] sm:$0xff] }
 0x1d8   : > { %v1406_v5 = vpop.f32.mrb[4].mxu1 }
 0x1d9   : > { %v829_v6 = vadd.f32 %v1406_v5, %v816_v3  ;;  %v785_v7 = vpop.f32.mrb[5].mxu1  ;;  %v1032_v3 = vld [vmem:[%s1862_s8 + $0x18] sm:$0xff]  ;;  %v1564_v5 = vmov 0.0  }
 0x1da   : > { %v828_v8 = vadd.f32 %v811_v4, %v785_v7  ;;  %v1562_v4 = vmov 0.0|0.0   ;;  %1460 = vmatprep.mubr.msk.f32.mxu1 %vm1563_vm3, %v1564_v5  ;;  %v1040_v7 = vpop.permute.xlu0 %1039 }
 0x1db   : > { %v833_v9 = vmax.f32 %v829_v6, 0.0  ;;  %1495 = vmatprep.subr.bf16.mxu1 %v1562_v4  ;;  %v1045_v6 = vpop.permute.xlu1 %1044 }
 0x1dc   : > { %v832_v11 = vmax.f32 %v828_v8, 0.0  ;;  %v1409_v12 = vpop.f32.mrb[6].mxu1 }
 0x1dd   : > { %v831_v14 = vadd.f32 %v1409_v12, %v826_v10  ;;  %v795_v15 = vpop.f32.mrb[7].mxu1 }
 0x1de   : > { %v830_v16 = vadd.f32 %v821_v13, %v795_v15  ;;  %v1471_v17 = vpack.c.bf16 %v833_v9, %v832_v11 }
 0x1df   : > { %v835_v18 = vmax.f32 %v831_v14, 0.0  ;;  %v1055_v13 = vpop.permute.xlu1 %1054 }
 0x1e0   : > { %v834_v19 = vmax.f32 %v830_v16, 0.0  ;;  %1472 = vmatprep.subr.bf16.mxu0 %v1471_v17  ;;  %v1050_v16 = vpop.permute.xlu0 %1049 }
 0x1e1   : > { %1474 = vmatpush3.bf16.msra.mxu0 %v1471_v17 }
 0x1e2   : > { %v1475_v20 = vpack.c.bf16 %v835_v18, %v834_v19 }
 0x1e4   : > { %1476 = vmatprep.subr.bf16.mxu0 %v1475_v20 }
 0x1e5   : > { %1478 = vmatpush3.bf16.msra.mxu0 %v1475_v20 }
 0x1e8   : > { %1419 = vmatmul.mubr.msk.f32.vlgmr.msra.gmra.mrb[0].mxu0 %vm706_vm1, %v837_v21 }
 0x1e9   : > { %1421 = vmatprep.mubr.msk.f32.mxu0 %vm706_vm1, %v838_v22 }
 0x1ec   : > { %1422 = vmatmul.mubr.msk.f32.gmra.mrb[2].mxu0 %vm706_vm1, %v839_v23 }
 0x1ed   : > { %1424 = vmatprep.mubr.msk.f32.mxu0 %vm706_vm1, %v840_v24  ;;  %v1159_v24 = vld [vmem:[%s1864_s10] sm:$0xff] }
 0x1f0   : > { %1425 = vmatmul.mubr.msk.f32.gmra.mrb[4].mxu0 %vm706_vm1, %v841_v25  ;;  %v1164_v25 = vpop.permute.xlu0 %1163 }
 0x1f1   : > { %1427 = vmatprep.mubr.msk.f32.mxu0 %vm706_vm1, %v842_v26 }
 0x1f4   : > { %1428 = vmatmul.mubr.msk.f32.gmra.mrb[6].mxu0 %vm706_vm1, %v843_v27 }
 0x1f5   : > { %1446 = vmatprep.mubr.msk.f32.mxu0 %vm1057_vm2, %v1029_v28 }
 0x2bb   : > { %v1420_v32 = vpop.f32.mrb[0].mxu0 }
 0x2bc   : > { %v988_v34 = vadd.f32 %v1420_v32, %v860_v29  ;;  %v982_v35 = vpop.f32.mrb[1].mxu0 }
 0x2bd   : > { %v983_v36 = vadd.f32 %v982_v35, %v855_v30 }
 0x2be   : > { %v1022_v37 = vmax.f32 %v988_v34, 0.0 }
 0x2bf   : > { %v1021_v38 = vmax.f32 %v983_v36, 0.0  ;;  %v1423_v39 = vpop.f32.mrb[2].mxu0 }
 0x2c0   : > { %v998_v40 = vadd.f32 %v1423_v39, %v870_v31  ;;  %v992_v41 = vpop.f32.mrb[3].mxu0 }
 0x2c1   : > { %v1479_v43 = vpack.c.bf16 %v1022_v37, %v1021_v38  ;;  %v993_v44 = vadd.f32 %v992_v41, %v865_v33 }
 0x2c2   : > { %v1024_v46 = vmax.f32 %v998_v40, 0.0 }
 0x2c3   : > { %v1023_v47 = vmax.f32 %v993_v44, 0.0  ;;  %v1426_v48 = vpop.f32.mrb[4].mxu0  ;;  %1480 = vmatprep.subr.bf16.mxu0 %v1479_v43 }
 0x2c4   : > { %v1008_v49 = vadd.f32 %v1426_v48, %v880_v42  ;;  %v1002_v50 = vpop.f32.mrb[5].mxu0  ;;  %1482 = vmatpush3.bf16.msra.mxu0 %v1479_v43 }
 0x2c5   : > { %v1483_v51 = vpack.c.bf16 %v1024_v46, %v1023_v47  ;;  %v1003_v52 = vadd.f32 %v1002_v50, %v875_v45 }
 0x2c6   : > { %v1026_v53 = vmax.f32 %v1008_v49, 0.0 }
 0x2c7   : > { %v1025_v55 = vmax.f32 %v1003_v52, 0.0  ;;  %v1429_v56 = vpop.f32.mrb[6].mxu0  ;;  %1484 = vmatprep.subr.bf16.mxu0 %v1483_v51 }
 0x2c8   : > { %v1018_v58 = vadd.f32 %v1429_v56, %v890_v54  ;;  %v1012_v59 = vpop.f32.mrb[7].mxu0  ;;  %1486 = vmatpush3.bf16.msra.mxu0 %v1483_v51 }
 0x2c9   : > { %v1487_v60 = vpack.c.bf16 %v1026_v53, %v1025_v55  ;;  %v1013_v61 = vadd.f32 %v1012_v59, %v885_v57 }
 0x2ca   : > { %v1028_v62 = vmax.f32 %v1018_v58, 0.0 }
 0x2cb   : > { %v1027_v63 = vmax.f32 %v1013_v61, 0.0  ;;  %1488 = vmatprep.subr.bf16.mxu0 %v1487_v60 }
 0x2cc   : > { %1490 = vmatpush3.bf16.msra.mxu0 %v1487_v60 }
 0x2cd   : > { %v1491_v0 = vpack.c.bf16 %v1028_v62, %v1027_v63 }
 0x2cf   : > { %1492 = vmatprep.subr.bf16.mxu0 %v1491_v0 }
 0x2d0   : > { %1494 = vmatpush3.bf16.msra.mxu0 %v1491_v0 }
 0x2d3   : > { %1447 = vmatmul.mubr.msk.f32.vlgmr.msra.gmra.mrb[8].mxu0 %vm1057_vm2, %v1030_v1 }
 0x2d4   : > { %1449 = vmatprep.mubr.msk.f32.mxu0 %vm1057_vm2, %v1031_v2 }
 0x2d7   : > { %1450 = vmatmul.mubr.msk.f32.gmra.mrb[10].mxu0 %vm1057_vm2, %v1032_v3 }
 0x3a6   : > { %v1448_v8 = vpop.f32.mrb[8].mxu0 }
 0x3a7   : > { %v1142_v9 = vadd.f32 %v1448_v8, %v1045_v6  ;;  %v1136_v10 = vpop.f32.mrb[9].mxu0 }
 0x3a8   : > { %v1137_v11 = vadd.f32 %v1136_v10, %v1040_v7 }
 0x3a9   : > { %v1156_v12 = vmax.f32 %v1142_v9, 0.0 }
 0x3aa   : > { %v1155_v14 = vmax.f32 %v1137_v11, 0.0  ;;  %v1451_v15 = vpop.f32.mrb[10].mxu0 }
 0x3ab   : > { %v1152_v17 = vadd.f32 %v1451_v15, %v1055_v13  ;;  %v1146_v18 = vpop.f32.mrb[11].mxu0 }
 0x3ac   : > { %v1496_v19 = vpack.c.bf16 %v1156_v12, %v1155_v14  ;;  %v1147_v20 = vadd.f32 %v1146_v18, %v1050_v16 }
 0x3ad   : > { %v1158_v21 = vmax.f32 %v1152_v17, 0.0 }
 0x3ae   : > { %v1157_v22 = vmax.f32 %v1147_v20, 0.0  ;;  %1497 = vmatpush3.bf16.msra.mxu1 %v1496_v19 }
 0x3af   : > { %1498 = vmatprep.subr.bf16.mxu1 %v1562_v4 }
 0x3b0   : > { %v1499_v23 = vpack.c.bf16 %v1158_v21, %v1157_v22 }
 0x3b2   : > { %1500 = vmatpush3.bf16.msra.mxu1 %v1499_v23 }
 0x3b5   : > { %1461 = vmatmul.mubr.msk.f32.vlgmr.msra.gmra.mrb[8].mxu1 %vm706_vm1, %v1159_v24 }
 0x488   : > { %v1235_v26 = vpop.f32.mrb[8].mxu1 }
 0x489   : > { %v1236_v27 = vadd.f32 %v1235_v26, %v1164_v25  ;;  %v1462_v28 = vpop.f32.mrb[9].mxu1 }
 0x48b   : > { %1239 = vst [vmem:[%s461_s16] sm:$0xff] %v1236_v27 }
 0x48c PF: > { %p19_p9 = scmp.ge.s32.totalorder %s1647_s25, 5   ;;  %s1867_s21 = smov %s1555_s22 }
 0x48d   : > { %s1868_s22 = smov %s1656_s28  ;;  %s1869_s23 = smov %s1647_s25 }
 0x48e   :  { %21 = sbr.rel (!%p19_p9) target bundleno = 2 (0x2), region = 141 }

</bundles_post_ra>
